<compile_context>
chip_gen: v5e
topology: v5e:2x2
jax: 0.10.0
libtpu: 0.0.40
codegen_flags: <defaults>
</compile_context>

<pallas_src>
import functools

import jax
import jax.numpy as jnp
from jax.experimental import pallas as pl
from jax.experimental.pallas import tpu as pltpu

_LANE = 128


def _round_up(x, m):
    return (x + m - 1) // m * m


def _vmem_plan():
    """Generation-aware VMEM plan.

    Returns (vmem_limit_bytes, per_step_budget_bytes, single_block_cap_bytes).
      v5e/v6e (128 MiB physical): limit 48 MiB, per-step budget 24 MiB, single-block cap 16 MiB
      v7x     ( 64 MiB physical): limit 32 MiB, per-step budget 16 MiB, single-block cap  8 MiB
    The per-step budget covers double-buffered blocks AND the in-kernel f32 temporaries.
    """
    phys = 64 << 20  # conservative fallback (v7x physical VMEM)
    try:
        info = pltpu.get_tpu_info()
        phys = int(getattr(info, "vmem_capacity_bytes", phys)) or phys
    except Exception:
        pass
    vmem_limit = min(phys // 2, 48 << 20)
    return vmem_limit, vmem_limit // 2, min(phys // 8, 16 << 20)


# --------------------------------------------------------------------------- #
# M == 1 GEMV kernels (VPU multiply + XLU lane reduce; MXU would be <1% used) #
# --------------------------------------------------------------------------- #
def _gemv_single_kernel(x_ref, w_ref, b_ref, o_ref):
    """Whole problem in one VMEM block (small K): no grid, no scratch.

    x_ref: (1, K)   flattened input, K on the lane axis
    w_ref: (OUT, K) weight in native nn.Linear layout (no transpose anywhere)
    b_ref: (OUT, 1) bias
    o_ref: (OUT, 1) output
    """
    prod = w_ref[...].astype(jnp.float32) * x_ref[...].astype(jnp.float32)
    acc = jnp.sum(prod, axis=-1, keepdims=True)            # (OUT, 1) via XLU
    o_ref[...] = (acc + b_ref[...].astype(jnp.float32)).astype(o_ref.dtype)


def _gemv_tiled_kernel(x_ref, w_ref, b_ref, o_ref, acc_ref, *, k_total, tk):
    """Large K: grid = (OUT blocks [parallel], K tiles [arbitrary/reduction]).

    x_ref: (1, TK), w_ref: (OUT_BLK, TK), b_ref/o_ref: (OUT_BLK, 1) resident,
    acc_ref: VMEM f32 (OUT_BLK, 1).  Ragged last K tile is masked in-kernel
    (no wrapper-side jnp.pad / extra HBM copy of W).
    """
    k = pl.program_id(1)

    @pl.when(k == 0)
    def _():
        # Fold the bias into the accumulator init -- no epilogue add.
        acc_ref[...] = b_ref[...].astype(jnp.float32)

    prod = w_ref[...].astype(jnp.float32) * x_ref[...].astype(jnp.float32)
    if k_total % tk:  # static: only the ragged-K case pays for the mask
        col = jax.lax.broadcasted_iota(jnp.int32, prod.shape, 1) + k * tk
        prod = jnp.where(col < k_total, prod, 0.0)
    acc_ref[...] += jnp.sum(prod, axis=-1, keepdims=True)

    @pl.when(k == pl.num_programs(1) - 1)
    def _():
        o_ref[...] = acc_ref[...].astype(o_ref.dtype)


# --------------------------------------------------------------------------- #
# Batched (M, K) GEMM kernels (MXU) for call sites sharing W across inputs    #
# --------------------------------------------------------------------------- #
def _gemm_single_kernel(x_ref, w_ref, b_ref, o_ref):
    """One block: (M, K) x (OUT, K)^T on the MXU, f32 accumulation."""
    acc = jax.lax.dot_general(
        x_ref[...], w_ref[...],
        dimension_numbers=(((1,), (1,)), ((), ())),
        preferred_element_type=jnp.float32)
    o_ref[...] = (acc + b_ref[...].astype(jnp.float32)).astype(o_ref.dtype)


def _gemm_tiled_kernel(x_ref, w_ref, b_ref, o_ref, acc_ref, *, k_total, tk):
    """K-tiled GEMM: x_ref (M, TK), w_ref (OUT, TK), b_ref (1, OUT) resident,
    o_ref (M, OUT) resident, acc_ref VMEM f32 (M, OUT)."""
    k = pl.program_id(0)

    @pl.when(k == 0)
    def _():
        acc_ref[...] = jnp.zeros_like(acc_ref) + b_ref[...].astype(jnp.float32)

    x = x_ref[...]
    w = w_ref[...]
    if k_total % tk:  # static: mask both operands of the ragged last tile
        base = k * tk
        xm = (jax.lax.broadcasted_iota(jnp.int32, x.shape, 1) + base) < k_total
        wm = (jax.lax.broadcasted_iota(jnp.int32, w.shape, 1) + base) < k_total
        x = jnp.where(xm, x, jnp.zeros_like(x))
        w = jnp.where(wm, w, jnp.zeros_like(w))
    acc_ref[...] += jax.lax.dot_general(
        x, w, dimension_numbers=(((1,), (1,)), ((), ())),
        preferred_element_type=jnp.float32)

    @pl.when(k == pl.num_programs(0) - 1)
    def _():
        o_ref[...] = acc_ref[...].astype(o_ref.dtype)


# --------------------------------------------------------------------------- #
# Wrappers                                                                    #
# --------------------------------------------------------------------------- #
def mlp_encoder_forward(x, w, b, *, single_block_max_bytes=None, tk=None):
    """Exact module semantics: flatten the WHOLE input, y = W @ x_flat + b.

    x: arbitrary-shape input with prod(shape) == K, w: (out_features, K), b: (out_features,).
    """
    out_features, K = w.shape
    x_flat = x.reshape(1, K)                      # torch .flatten() (C order)
    b2 = b.reshape(out_features, 1)
    out_dtype = x.dtype

    isz_w = jnp.dtype(w.dtype).itemsize
    isz_x = jnp.dtype(x.dtype).itemsize
    w_bytes = out_features * K * isz_w
    x_bytes = K * isz_x

    vmem_limit, step_budget, single_cap = _vmem_plan()
    if single_block_max_bytes is None:
        single_block_max_bytes = single_cap

    cost = pl.CostEstimate(
        flops=2 * out_features * K,
        transcendentals=0,
        bytes_accessed=w_bytes + x_bytes + 2 * out_features * 4,
    )

    # Single-block estimate includes the in-kernel f32 upcasts and the (OUT, K)
    # f32 product intermediate, not just the storage-dtype blocks.
    single_bytes = w_bytes + x_bytes + 8 * out_features * K + 4 * K

    if single_bytes <= single_block_max_bytes and tk is None:
        # Shipped config (K=1024, OUT=32): one invocation, zero grid-step overhead.
        out = pl.pallas_call(
            _gemv_single_kernel,
            out_shape=jax.ShapeDtypeStruct((out_features, 1), out_dtype),
            compiler_params=pltpu.CompilerParams(vmem_limit_bytes=vmem_limit),
            cost_estimate=cost,
        )(x_flat, w, b2)
        return out.reshape(out_features)

    # ---- K-tiled GEMV path ----
    # OUT split into 2 row-blocks (each a multiple of 8) so v7x's second TensorCore
    # streams half of W.  tk is derived with the halved OUT block, so the total grid
    # step count is ~unchanged on single-core v5e/v6e.
    n_out_blocks = 2 if (out_features >= 16 and out_features % 16 == 0) else 1
    out_blk = out_features // n_out_blocks

    if tk is None:
        # Bytes per lane-column per grid step: double-buffered W/x blocks in their
        # storage dtype + in-kernel f32 W upcast + (out_blk, tk) f32 product + f32 x copy.
        per_lane = out_blk * (2 * isz_w + 8) + 2 * isz_x + 8
        tk = step_budget // per_lane
    tk = max(_LANE, (tk // _LANE) * _LANE)        # lane-aligned tile
    tk = min(tk, _round_up(K, _LANE))             # don't over-extend tiny K

    kernel = functools.partial(_gemv_tiled_kernel, k_total=K, tk=tk)
    out = pl.pallas_call(
        kernel,
        out_shape=jax.ShapeDtypeStruct((out_features, 1), out_dtype),
        grid_spec=pltpu.PrefetchScalarGridSpec(
            num_scalar_prefetch=0,
            grid=(n_out_blocks, pl.cdiv(K, tk)),
            in_specs=[
                pl.BlockSpec((1, tk), lambda o, k: (0, k)),           # x_flat
                pl.BlockSpec((out_blk, tk), lambda o, k: (o, k)),     # W (native layout)
                pl.BlockSpec((out_blk, 1), lambda o, k: (o, 0)),      # bias (resident)
            ],
            out_specs=pl.BlockSpec((out_blk, 1), lambda o, k: (o, 0)),
            scratch_shapes=[pltpu.VMEM((out_blk, 1), jnp.float32)],
        ),
        compiler_params=pltpu.CompilerParams(
            dimension_semantics=("parallel", "arbitrary"),   # OUT blocks || , K reduction
            vmem_limit_bytes=vmem_limit,
        ),
        cost_estimate=cost,
    )(x_flat, w, b2)
    return out.reshape(out_features)


def mlp_encoder_forward_batched(xs, w, b, *, single_block_max_bytes=None, tk=None):
    """Throughput variant: xs has a leading batch dim M; each row is flattened and
    sent through the SAME Linear (one pallas_call for the whole batch -> amortizes
    launch overhead and the HBM read of W, MXU does the math)."""
    out_features, K = w.shape
    M = xs.shape[0]
    x2 = xs.reshape(M, K)
    b2 = b.reshape(1, out_features)
    out_dtype = xs.dtype

    isz_w = jnp.dtype(w.dtype).itemsize
    isz_x = jnp.dtype(xs.dtype).itemsize
    w_bytes = out_features * K * isz_w
    x_bytes = M * K * isz_x

    vmem_limit, step_budget, single_cap = _vmem_plan()
    if single_block_max_bytes is None:
        single_block_max_bytes = single_cap

    cost = pl.CostEstimate(
        flops=2 * M * out_features * K,
        transcendentals=0,
        bytes_accessed=w_bytes + x_bytes + (M + 1) * out_features * 4,
    )

    single_bytes = w_bytes + x_bytes + 4 * (out_features + M) * K  # incl. f32 copies
    if single_bytes <= single_block_max_bytes and tk is None:
        return pl.pallas_call(
            _gemm_single_kernel,
            out_shape=jax.ShapeDtypeStruct((M, out_features), out_dtype),
            compiler_params=pltpu.CompilerParams(vmem_limit_bytes=vmem_limit),
            cost_estimate=cost,
        )(x2, w, b2)

    # K-tiled GEMM (reduction grid); bias/output resident, ragged K masked in-kernel.
    # TODO(synk): a megacore OUT split here needs OUT % 128 == 0 (OUT is the lane axis
    # of the output block); not worthwhile at OUT=32.
    if tk is None:
        per_lane = M * (2 * isz_x + 4) + out_features * (2 * isz_w + 4)
        tk = step_budget // per_lane
    tk = max(_LANE, (tk // _LANE) * _LANE)
    tk = min(tk, _round_up(K, _LANE))

    kernel = functools.partial(_gemm_tiled_kernel, k_total=K, tk=tk)
    return pl.pallas_call(
        kernel,
        out_shape=jax.ShapeDtypeStruct((M, out_features), out_dtype),
        grid_spec=pltpu.PrefetchScalarGridSpec(
            num_scalar_prefetch=0,
            grid=(pl.cdiv(K, tk),),
            in_specs=[
                pl.BlockSpec((M, tk), lambda k: (0, k)),              # x batch
                pl.BlockSpec((out_features, tk), lambda k: (0, k)),   # W (native layout)
                pl.BlockSpec((1, out_features), lambda k: (0, 0)),    # bias (resident)
            ],
            out_specs=pl.BlockSpec((M, out_features), lambda k: (0, 0)),
            scratch_shapes=[pltpu.VMEM((M, out_features), jnp.float32)],
        ),
        compiler_params=pltpu.CompilerParams(
            dimension_semantics=("arbitrary",),
            vmem_limit_bytes=vmem_limit,
        ),
        cost_estimate=cost,
    )(x2, w, b2)


if __name__ == "__main__":
    # Module config: in_shape = (4, 16, 16) -> K = 1024, out_features = 32.
    in_shape = (4, 16, 16)
    out_features = 32
    K = 1
    for d in in_shape:
        K *= d

    key = jax.random.PRNGKey(0)
    kx, kw, kb, kxb = jax.random.split(key, 4)

    # Deterministic "nn.Linear"-style init: U(-1/sqrt(K), 1/sqrt(K)).
    bound = 1.0 / (K ** 0.5)
    w = jax.random.uniform(kw, (out_features, K), jnp.float32, -bound, bound)
    b = jax.random.uniform(kb, (out_features,), jnp.float32, -bound, bound)
    x = jax.random.normal(kx, in_shape, jnp.float32)

    # Reference for the module's exact semantics.
    y_ref = w @ x.reshape(-1) + b

    # 1) Shipped config: single-block VPU GEMV fast path.
    y = jax.block_until_ready(mlp_encoder_forward(x, w, b))
    assert y.shape == (out_features,)
    assert jnp.allclose(y, y_ref, atol=1e-5, rtol=1e-5)

    # 2) Forced K-tiled path (divisible tiles) — exercises the parallel OUT split.
    y_t = jax.block_until_ready(
        mlp_encoder_forward(x, w, b, single_block_max_bytes=0, tk=256))
    assert jnp.allclose(y_t, y_ref, atol=1e-5, rtol=1e-5)

    # 3) Forced K-tiled path with a RAGGED last tile (in-kernel mask, no jnp.pad).
    y_r = jax.block_until_ready(
        mlp_encoder_forward(x, w, b, single_block_max_bytes=0, tk=384))
    assert jnp.allclose(y_r, y_ref, atol=1e-5, rtol=1e-5)

    # 4) Batched variant: M inputs share W, one pallas_call (MXU GEMM).
    M = 4
    xs = jax.random.normal(kxb, (M,) + in_shape, jnp.float32)
    yb_ref = xs.reshape(M, -1) @ w.T + b
    yb = jax.block_until_ready(mlp_encoder_forward_batched(xs, w, b))
    assert yb.shape == (M, out_features)
    # Looser tolerance: MXU default precision for f32 inputs uses bf16 passes,
    # which may differ slightly from XLA's reference dot.
    assert jnp.allclose(yb, yb_ref, atol=1e-2, rtol=1e-2)

    # 5) Batched, forced K-tiled (ragged) path.
    yb_t = jax.block_until_ready(
        mlp_encoder_forward_batched(xs, w, b, single_block_max_bytes=0, tk=384))
    assert jnp.allclose(yb_t, yb_ref, atol=1e-2, rtol=1e-2)

    print("KERNEL_OK")
</pallas_src>

<mosaic_0001>
module attributes {stable_mosaic.version = 11 : i64} {
  func.func @_gemv_single_kernel(%arg0: memref<1x1024xf32, #tpu.memory_space<vmem>>, %arg1: memref<32x1024xf32, #tpu.memory_space<vmem>>, %arg2: memref<32x1xf32, #tpu.memory_space<vmem>>, %arg3: memref<32x1xf32, #tpu.memory_space<vmem>>) attributes {dimension_semantics = [], scalar_prefetch = 0 : i64, scratch_operands = 0 : i64, tpu.core_type = #tpu.core_type<tc>} {
    %c0 = arith.constant 0 : index
    %c0_0 = arith.constant 0 : index
    %0 = vector.load %arg1[%c0, %c0_0] : memref<32x1024xf32, #tpu.memory_space<vmem>>, vector<32x1024xf32>
    %c0_1 = arith.constant 0 : index
    %c0_2 = arith.constant 0 : index
    %1 = vector.load %arg0[%c0_1, %c0_2] : memref<1x1024xf32, #tpu.memory_space<vmem>>, vector<1x1024xf32>
    %2 = vector.broadcast %1 : vector<1x1024xf32> to vector<32x1024xf32>
    %3 = arith.mulf %0, %2 : vector<32x1024xf32>
    %cst = arith.constant dense<0.000000e+00> : vector<32xf32>
    %4 = vector.multi_reduction <add>, %3, %cst [1] : vector<32x1024xf32> to vector<32xf32>
    %5 = vector.shape_cast %4 : vector<32xf32> to vector<32x1xf32>
    %c0_3 = arith.constant 0 : index
    %c0_4 = arith.constant 0 : index
    %6 = vector.load %arg2[%c0_3, %c0_4] : memref<32x1xf32, #tpu.memory_space<vmem>>, vector<32x1xf32>
    %7 = arith.addf %5, %6 : vector<32x1xf32>
    %c0_5 = arith.constant 0 : index
    %c0_6 = arith.constant 0 : index
    %8 = vector.load %arg3[%c0_5, %c0_6] : memref<32x1xf32, #tpu.memory_space<vmem>>, vector<32x1xf32>
    tpu.vector_store %arg3[%c0_5, %c0_6], %7 {strides = array<i32>} : memref<32x1xf32, #tpu.memory_space<vmem>>, vector<32x1xf32>,
    return
  }
}

</mosaic_0001>

<bundles_post_ra>
// kernel: tpu_custom_call.1
= control target key start
LH: loop header
LB: loop body
LE: loop exit
PB: predicated region body
PF: predicated region fallthrough
CT: control target
= control target key end

     0   :  { %8 = vsyncpa [#allocation3], 0  ;;  %s195_s15 = smov [#allocation2]   ;;  %s196_s17 = smov 1024   ;;  %s272_s0 = inlined_call_operand.vmem [shape: f32[1,1024], index: 0, kind: input, shape index: {}]   ;;  %s273_s1 = inlined_call_operand.hbm [shape: f32[32,1024], index: 1, kind: input, shape index: {}]   ;;  %s274_s2 = inlined_call_operand.vmem [shape: f32[32,1], index: 2, kind: input, shape index: {}]   ;;  %s275_s3 = inlined_call_operand.vmem [shape: f32[32,1], index: 3, kind: output, shape index: {}]  }
   0x1   :  { %s15_s14 = sshll.u32 %s273_s1, 4  ;;  %s17_s16 = sshll.u32 %s195_s15, 4  ;;  %s16_s14 = int_to_ptr.hbm [resolvable:$true] %s15_s14  ;;  %s18_s16 = int_to_ptr.vmem [resolvable:$true] %s17_s16 }
   0x2   :  { %s197_s18 = smov 64  }
   0x3   :  { %23 = dma.hbm_to_vmem [thread:$0]  %s16_s14, 4096, %s18_s16, [#allocation3], %s196_s17, %s196_s17, %s197_s18  }
   0x4   :  { %193 = dma.done.wait [#allocation3], 4096  }
   0x5   :  { %194 = vsyncadd [#allocation3], 4294963200  ;;  %v46_v0 = vld [vmem:[#allocation2 + $0x80] sm:$0xff]  ;;  %v47_v1 = vld [vmem:[#allocation2 + $0x88] sm:$0xff]  ;;  %vm156_vm0 = vcmask 7168  }
   0x6   :  { %v48_v2 = vld [vmem:[#allocation2 + $0x90] sm:$0xff]  ;;  %v62_v3 = vld [vmem:[%s272_s0] sm:$0xff]  ;;  %v49_v4 = vld [vmem:[#allocation2 + $0x98] sm:$0xff] }
   0x7   :  { %v64_v5 = vperm.slane %v62_v3, 0  ;;  %v65_v6 = vperm.slane %v62_v3, 1  ;;  %v66_v7 = vperm.slane %v62_v3, 2  ;;  %v224_v8 = vperm.slane %v62_v3, 3  ;;  %v30_v10 = vld [vmem:[#allocation2] sm:$0xff]  ;;  %v31_v11 = vld [vmem:[#allocation2 + $0x8] sm:$0xff] }
   0x8   :  { %v226_v9 = vperm.slane %v62_v3, 4  ;;  %v32_v12 = vld [vmem:[#allocation2 + $0x10] sm:$0xff]  ;;  %v50_v13 = vld [vmem:[#allocation2 + $0xa0] sm:$0xff]  ;;  %v228_v17 = vperm.slane %v62_v3, 5  ;;  %v230_v18 = vperm.slane %v62_v3, 6  ;;  %v33_v20 = vld [vmem:[#allocation2 + $0x18] sm:$0xff] }
   0x9   :  { %v96_v14 = vmul.f32 %v64_v5, %v46_v0  ;;  %v97_v15 = vmul.f32 %v65_v6, %v47_v1  ;;  %v98_v16 = vmul.f32 %v66_v7, %v48_v2  ;;  %v99_v19 = vmul.f32 %v224_v8, %v49_v4  ;;  %v54_v21 = vld [vmem:[#allocation2 + $0xc0] sm:$0xff]  ;;  %v51_v22 = vld [vmem:[#allocation2 + $0xa8] sm:$0xff]  ;;  %v56_v28 = vld [vmem:[#allocation2 + $0xd0] sm:$0xff] }
   0xa   :  { %v80_v24 = vmul.f32 %v64_v5, %v30_v10  ;;  %v81_v25 = vmul.f32 %v65_v6, %v31_v11  ;;  %v82_v26 = vmul.f32 %v66_v7, %v32_v12  ;;  %v55_v27 = vld [vmem:[#allocation2 + $0xc8] sm:$0xff]  ;;  %v52_v29 = vld [vmem:[#allocation2 + $0xb0] sm:$0xff]  ;;  %v100_v30 = vmul.f32 %v226_v9, %v50_v13  ;;  %v34_v31 = vld [vmem:[#allocation2 + $0x20] sm:$0xff] }
   0xb   :  { %v130_v23 = vadd.f32 %v97_v15, %v96_v14  ;;  %v83_v33 = vmul.f32 %v224_v8, %v33_v20  ;;  %v57_v35 = vld [vmem:[#allocation2 + $0xd8] sm:$0xff]  ;;  %v104_v36 = vmul.f32 %v64_v5, %v54_v21  ;;  %v38_v37 = vld [vmem:[#allocation2 + $0x40] sm:$0xff]  ;;  %v39_v38 = vld [vmem:[#allocation2 + $0x48] sm:$0xff]  ;;  %v71_v39 = vperm.slane %v62_v3, 7 }
   0xc   :  { %v112_v34 = vadd.f32 %v81_v25, %v80_v24  ;;  %v101_v40 = vmul.f32 %v228_v17, %v51_v22  ;;  %v35_v41 = vld [vmem:[#allocation2 + $0x28] sm:$0xff]  ;;  %v105_v42 = vmul.f32 %v65_v6, %v55_v27  ;;  %v106_v43 = vmul.f32 %v66_v7, %v56_v28  ;;  %v40_v44 = vld [vmem:[#allocation2 + $0x50] sm:$0xff]  ;;  %v53_v45 = vld [vmem:[#allocation2 + $0xb8] sm:$0xff] }
   0xd   :  { %v131_v32 = vadd.f32 %v130_v23, %v98_v16  ;;  %v102_v46 = vmul.f32 %v230_v18, %v52_v29  ;;  %v36_v48 = vld [vmem:[#allocation2 + $0x30] sm:$0xff]  ;;  %v84_v49 = vmul.f32 %v226_v9, %v34_v31  ;;  %v58_v51 = vld [vmem:[#allocation2 + $0xe0] sm:$0xff]  ;;  %v107_v52 = vmul.f32 %v224_v8, %v57_v35  ;;  %v41_v54 = vld [vmem:[#allocation2 + $0x58] sm:$0xff] }
   0xe   :  { %v113_v50 = vadd.f32 %v112_v34, %v82_v26  ;;  %v139_v53 = vadd.f32 %v105_v42, %v104_v36  ;;  %v88_v55 = vmul.f32 %v64_v5, %v38_v37  ;;  %v89_v56 = vmul.f32 %v65_v6, %v39_v38  ;;  %v37_v58 = vld [vmem:[#allocation2 + $0x38] sm:$0xff]  ;;  %v59_v61 = vld [vmem:[#allocation2 + $0xe8] sm:$0xff]  ;;  %v42_v3 = vld [vmem:[#allocation2 + $0x60] sm:$0xff] }
   0xf   :  { %v132_v47 = vadd.f32 %v131_v32, %v99_v19  ;;  %v85_v59 = vmul.f32 %v228_v17, %v35_v41  ;;  %v90_v62 = vmul.f32 %v66_v7, %v40_v44  ;;  %v103_v63 = vmul.f32 %v71_v39, %v53_v45  ;;  %v60_v11 = vld [vmem:[#allocation2 + $0xf0] sm:$0xff]  ;;  %v43_v15 = vld [vmem:[#allocation2 + $0x68] sm:$0xff]  ;;  %v61_v21 = vld [vmem:[#allocation2 + $0xf8] sm:$0xff] }
  0x10   :  { %v114_v60 = vadd.f32 %v113_v50, %v83_v33  ;;  %v86_v0 = vmul.f32 %v230_v18, %v36_v48  ;;  %v108_v1 = vmul.f32 %v226_v9, %v58_v51  ;;  %v140_v2 = vadd.f32 %v139_v53, %v106_v43  ;;  %v44_v24 = vld [vmem:[#allocation2 + $0x70] sm:$0xff]  ;;  %v45_v29 = vld [vmem:[#allocation2 + $0x78] sm:$0xff]  ;;  %v149_v45 = vld [vmem:[%s274_s2 + $0x8] sm:$0xff] }
  0x11   :  { %v133_v57 = vadd.f32 %v132_v47, %v100_v30  ;;  %v91_v5 = vmul.f32 %v224_v8, %v41_v54  ;;  %v121_v6 = vadd.f32 %v89_v56, %v88_v55  ;;  %v87_v12 = vmul.f32 %v71_v39, %v37_v58  ;;  %v151_v43 = vld [vmem:[%s274_s2 + $0x18] sm:$0xff] }
  0x12   :  { %v115_v10 = vadd.f32 %v114_v60, %v84_v49  ;;  %v109_v13 = vmul.f32 %v228_v17, %v59_v61  ;;  %v141_v14 = vadd.f32 %v140_v2, %v107_v52  ;;  %v92_v19 = vmul.f32 %v226_v9, %v42_v3 }
  0x13   :  { %v134_v4 = vadd.f32 %v133_v57, %v101_v40  ;;  %v122_v20 = vadd.f32 %v121_v6, %v90_v62  ;;  %v110_v22 = vmul.f32 %v230_v18, %v60_v11  ;;  %v93_v8 = vmul.f32 %v228_v17, %v43_v15  ;;  %v150_v17 = vld [vmem:[%s274_s2 + $0x10] sm:$0xff] }
  0x14   :  { %v116_v7 = vadd.f32 %v115_v10, %v85_v59  ;;  %v142_v23 = vadd.f32 %v141_v14, %v108_v1  ;;  %v111_v31 = vmul.f32 %v71_v39, %v61_v21  ;;  %v94_v32 = vmul.f32 %v230_v18, %v44_v24  ;;  %v148_v18 = vld [vmem:[%s274_s2] sm:$0xff] }
  0x15   :  { %v135_v16 = vadd.f32 %v134_v4, %v102_v46  ;;  %v123_v27 = vadd.f32 %v122_v20, %v91_v5  ;;  %v95_v34 = vmul.f32 %v71_v39, %v45_v29 }
  0x16   :  { %v117_v26 = vadd.f32 %v116_v7, %v86_v0  ;;  %v143_v28 = vadd.f32 %v142_v23, %v109_v13 }
  0x17   :  { %v136_v25 = vadd.f32 %v135_v16, %v103_v63  ;;  %v124_v33 = vadd.f32 %v123_v27, %v92_v19 }
  0x18   :  { %v118_v30 = vadd.f32 %v117_v26, %v87_v12  ;;  %v144_v9 = vadd.f32 %v143_v28, %v110_v22 }
  0x19   :  { %137 = vadd.xlane.f32.xlu1 %v136_v25  ;;  %v125_v35 = vadd.f32 %v124_v33, %v93_v8 }
  0x1a   :  { %119 = vadd.xlane.f32.xlu0 %v118_v30  ;;  %v145_v36 = vadd.f32 %v144_v9, %v111_v31 }
  0x1b   :  { %v126_v37 = vadd.f32 %v125_v35, %v94_v32 }
  0x1d   :  { %v127_v38 = vadd.f32 %v126_v37, %v95_v34 }
  0x21   :  { %146 = vadd.xlane.f32.xlu1 %v145_v36 }
  0x22   :  { %128 = vadd.xlane.f32.xlu0 %v127_v38 }
  0x8c   :  { %v138_v40 = vpop.xlane.xlu1 %137 }
  0x8d   :  { %v154_v41 = vadd.f32 %v150_v17, %v138_v40  ;;  %v120_v42 = vpop.xlane.xlu0 %119 }
  0x8e   :  { %v152_v39 = vadd.f32 %v148_v18, %v120_v42 }
  0x8f   :  { %159 = vst.msk [vmem:[%s275_s3 + $0x10] sm:$0xff] %vm156_vm0, %v154_v41 }
  0x90   :  { %157 = vst.msk [vmem:[%s275_s3] sm:$0xff] %vm156_vm0, %v152_v39 }
  0x94   :  { %v147_v44 = vpop.xlane.xlu1 %146 }
  0x95   :  { %v155_v46 = vadd.f32 %v151_v43, %v147_v44  ;;  %v129_v47 = vpop.xlane.xlu0 %128 }
  0x96   :  { %v153_v48 = vadd.f32 %v149_v45, %v129_v47 }
  0x97   :  { %160 = vst.msk [vmem:[%s275_s3 + $0x18] sm:$0xff] %vm156_vm0, %v155_v46 }
  0x98   :  { %158 = vst.msk [vmem:[%s275_s3 + $0x8] sm:$0xff] %vm156_vm0, %v153_v48 }
  0x99   :  { %165 = vsyncpa [#allocation3], 1 }

</bundles_post_ra>
